<compile_context>
chip_gen: v7x
topology: tpu7x:2x2x1
jax: 0.10.0
libtpu: 0.0.40
codegen_flags: <defaults>
</compile_context>

<pallas_src>
import jax
import jax.numpy as jnp
from jax import lax
from jax.experimental import pallas as pl
from jax.experimental.pallas import tpu as pltpu

LN_EPS = 1e-5            # F.layer_norm default eps
NORM_EPS = 1e-12         # F.normalize default eps
FLT_MAX = float(jnp.finfo(jnp.float32).max)


def attention_pool_kernel(x_ref, mask_ref, wflat_ref, bound_ref, q_ref,
                          wkv_ref, seg_ref, segt_ref, bsel_ref, wo_ref,
                          out_ref, m_sc):
    """One grid step pools `batch_tile` batch elements (rows = batch_tile * n keys)."""
    rows, _ = x_ref.shape
    inner = wflat_ref.shape[1]
    heads = seg_ref.shape[1]
    batch_tile = bsel_ref.shape[0]
    n = rows // batch_tile

    seg = seg_ref[...]            # (inner, heads) bf16 0/1: lane d -> head d // dim_head
    seg_t = segt_ref[...]         # (heads, inner) bf16
    bsel = bsel_ref[...]          # (batch_tile, rows) bf16 0/1: row j -> element j // n
    w_flat = wflat_ref[...]       # (1, inner) f32, precomputed query (norm+scale+gammas folded)
    mask = mask_ref[...]          # (rows, 1) f32, 1.0 = valid key
    valid = mask > 0.5

    # ---- fused K/V projection over the whole tile (M = batch_tile*n rows, bf16 MXU) ----
    x_bf = x_ref[...].astype(jnp.bfloat16)                 # in-kernel cast, hidden under DMA
    kv = jnp.dot(x_bf, wkv_ref[...], preferred_element_type=jnp.float32)   # (rows, 2*inner)
    k_proj = kv[:, :inner]                                 # lane-aligned when inner % 128 == 0
    v_proj = kv[:, inner:]

    # ---- per-key, per-head inverse RMS norm (F.normalize) ----
    knorm2 = jnp.dot((k_proj * k_proj).astype(jnp.bfloat16), seg,
                     preferred_element_type=jnp.float32)   # (rows, heads)
    inv_k = lax.rsqrt(jnp.maximum(knorm2, NORM_EPS * NORM_EPS))   # == 1/max(||k||, eps)

    # ---- logits: dots[j,h] = <w_flat_h, k_hat_h[j]>  (query side already folded) ----
    dots = jnp.dot((k_proj * w_flat).astype(jnp.bfloat16), seg,
                   preferred_element_type=jnp.float32) * inv_k     # (rows, heads)

    # ---- per-element softmax max (stabilization).  Tiny static loop: slice + max +
    #      store; all heavy work stays batched.  Masked slots are filled with the
    #      finite per-head bound -|w_flat_h| so exp() arguments stay bounded. ----
    dmax_src = jnp.where(valid, dots, -bound_ref[...])
    for bb in range(batch_tile):
        blk = dmax_src[bb * n:(bb + 1) * n, :]
        mx = jnp.max(blk, axis=0, keepdims=True)                    # (1, heads)
        m_sc[pl.ds(bb * n, n), :] = jnp.broadcast_to(mx, (n, heads))

    # masked keys contribute exactly 0 (matches masked_fill(-FLT_MAX) + softmax)
    e = jnp.where(valid, jnp.exp(dots - m_sc[...]), 0.0)            # (rows, heads)

    # ---- softmax denominator + attention applied to V, batched via 0/1 matmuls ----
    denom = jnp.dot(bsel, e.astype(jnp.bfloat16),
                    preferred_element_type=jnp.float32)             # (batch_tile, heads)
    # clamp only triggers for fully-masked elements (see module docstring)
    inv_denom = pl.reciprocal(jnp.maximum(denom, 1e-30), approx=True)

    e_exp = jnp.dot(e.astype(jnp.bfloat16), seg_t,
                    preferred_element_type=jnp.float32)             # (rows, inner)
    wsum = jnp.dot(bsel, (e_exp * v_proj).astype(jnp.bfloat16),
                   preferred_element_type=jnp.float32)              # (batch_tile, inner)
    inv_exp = jnp.dot(inv_denom.astype(jnp.bfloat16), seg_t,
                      preferred_element_type=jnp.float32)           # (batch_tile, inner)
    out_bt = wsum * inv_exp                                         # attn @ v, per element

    # ---- single batched output projection + residual ----
    pooled = jnp.dot(out_bt.astype(jnp.bfloat16), wo_ref[...],
                     preferred_element_type=jnp.float32)            # (batch_tile, dim)
    out_ref[0, :, :] = pooled + q_ref[...]                          # + raw query (residual)


def _vmem_estimate_bytes(batch_tile, n, dim, inner, heads):
    rows = batch_tile * n
    x_tile = 2 * rows * dim * 4                                     # f32 input, double-buffered
    interm = rows * (dim * 2 + 2 * inner * 4 * 2 + heads * 4 * 4)   # bf16 x + f32 intermediates
    weights = 2 * (dim * 2 * inner + inner * dim + 2 * inner * heads + batch_tile * rows)
    small = rows * heads * 4 + 2 * batch_tile * dim * 4
    return x_tile + interm + weights + small


def _choose_batch_tile(b, n, dim, inner, heads, vmem_capacity):
    """Smallest tile reaching ~256 MXU rows that fits VMEM; else largest fitting."""
    budget = int(vmem_capacity * 0.6)
    cands = [d for d in range(1, b + 1)
             if b % d == 0 and ((d * n) % 8 == 0 or d == b)]
    fitting = [d for d in cands if _vmem_estimate_bytes(d, n, dim, inner, heads) <= budget]
    if not fitting:
        fitting = [min(cands)]
    big = [d for d in fitting if d * n >= 256]
    return min(big) if big else max(fitting)


def attention_pooling(x, attn_mask, params, *, heads, dim_head, batch_tile=None):
    """x: (b, n, dim); attn_mask: (b, n) bool.  Returns (b*n, dim)."""
    b, n, dim = x.shape
    inner = heads * dim_head

    # Generation-aware VMEM budget (v5e/v6e: 128 MiB, v7x: 64 MiB).
    try:
        vmem_cap = int(pltpu.get_tpu_info().vmem_capacity_bytes)
        vmem_limit = int(vmem_cap * 0.85)
    except Exception:
        vmem_cap = 64 * 1024 * 1024
        vmem_limit = None

    if batch_tile is None:
        batch_tile = _choose_batch_tile(b, n, dim, inner, heads, vmem_cap)
    assert b % batch_tile == 0, (b, batch_tile)
    rows = batch_tile * n
    assert rows % 8 == 0 or batch_tile == b, (rows, b * n)
    nblk = b // batch_tile

    # ---- grid-invariant query path, hoisted out of the kernel (f32, params only) ----
    q_row = params["queries"].astype(jnp.float32).reshape(1, dim)
    ln_g = params["ln_gamma"].astype(jnp.float32).reshape(1, dim)
    mean = jnp.mean(q_row, axis=-1, keepdims=True)
    cen = q_row - mean
    var = jnp.mean(cen * cen, axis=-1, keepdims=True)
    qn = cen * lax.rsqrt(var + LN_EPS) * ln_g               # LayerNorm (beta is a zero buffer)
    q_proj = (qn @ params["wq"].astype(jnp.float32)).reshape(heads, dim_head)
    qnorm = jnp.sqrt(jnp.sum(q_proj * q_proj, axis=-1, keepdims=True))
    q_hat = q_proj / jnp.maximum(qnorm, NORM_EPS)           # F.normalize
    # dots = sum_d (q_hat * scale * gq) * (k_hat * scale * gk) -> fold dim_head*gq*gk
    wf = (q_hat * float(dim_head)
          * params["q_gamma"].astype(jnp.float32).reshape(heads, dim_head)
          * params["k_gamma"].astype(jnp.float32).reshape(heads, dim_head))
    w_flat = wf.reshape(1, inner)
    # Cauchy-Schwarz per-head bound on |logit| (k_hat is unit-norm); only used as the
    # finite masked-fill value for the per-element max inside the kernel.
    bound = jnp.sqrt(jnp.sum(wf * wf, axis=-1)).reshape(1, heads)

    # ---- data / weights (x kept in native dtype; cast to bf16 in-kernel) ----
    x_flat = x.reshape(b * n, dim)
    mask_f = attn_mask.astype(jnp.float32).reshape(b * n, 1)
    wkv = params["wkv"].astype(jnp.bfloat16)                # (dim, 2*inner) fused K/V weights
    wo = params["wo"].astype(jnp.bfloat16)                  # (inner, dim)

    head_id = jnp.arange(inner, dtype=jnp.int32) // dim_head
    seg = (head_id[:, None] == jnp.arange(heads, dtype=jnp.int32)[None, :]
           ).astype(jnp.bfloat16)                           # (inner, heads)
    seg_t = seg.T                                           # (heads, inner)
    row_elem = jnp.arange(rows, dtype=jnp.int32) // n
    bsel = (jnp.arange(batch_tile, dtype=jnp.int32)[:, None] == row_elem[None, :]
            ).astype(jnp.bfloat16)                          # (batch_tile, rows)

    const2 = lambda i: (0, 0)
    single = pl.Buffered(1)    # constant-index blocks: fetched once, single-buffered

    pooled = pl.pallas_call(
        attention_pool_kernel,
        out_shape=jax.ShapeDtypeStruct((nblk, batch_tile, dim), jnp.float32),
        grid_spec=pltpu.PrefetchScalarGridSpec(
            num_scalar_prefetch=0,
            grid=(nblk,),
            in_specs=[
                pl.BlockSpec((rows, dim), lambda i: (i, 0)),                   # x
                pl.BlockSpec((rows, 1), lambda i: (i, 0)),                     # key mask
                pl.BlockSpec((1, inner), const2, pipeline_mode=single),        # w_flat
                pl.BlockSpec((1, heads), const2, pipeline_mode=single),        # logit bound
                pl.BlockSpec((1, dim), const2, pipeline_mode=single),          # raw query row
                pl.BlockSpec((dim, 2 * inner), const2, pipeline_mode=single),  # Wkv (fused)
                pl.BlockSpec((inner, heads), const2, pipeline_mode=single),    # segment-sum
                pl.BlockSpec((heads, inner), const2, pipeline_mode=single),    # segment-bcast
                pl.BlockSpec((batch_tile, rows), const2, pipeline_mode=single),# batch selector
                pl.BlockSpec((inner, dim), const2, pipeline_mode=single),      # Wo
            ],
            out_specs=pl.BlockSpec((1, batch_tile, dim), lambda i: (i, 0, 0)),
            scratch_shapes=[pltpu.VMEM((rows, heads), jnp.float32)],           # per-elem max
        ),
        compiler_params=pltpu.CompilerParams(
            dimension_semantics=("parallel",),
            vmem_limit_bytes=vmem_limit,
        ),
    )(x_flat, mask_f, w_flat, bound, q_row, wkv, seg, seg_t, bsel, wo)

    # Compact (b, dim) kernel output -> n-fold broadcast done outside the kernel.
    pooled = pooled.reshape(b, dim)
    out = jnp.broadcast_to(pooled[:, None, :], (b, n, dim)).reshape(b * n, dim)
    return out.astype(x.dtype)


def attention_pooling_ref(x, attn_mask, params, *, heads, dim_head):
    """Pure-JAX f32 reference (same math as the PyTorch module)."""
    b, n, dim = x.shape
    inner = heads * dim_head
    queries = jnp.broadcast_to(params["queries"][None, None, :], (b, n, dim))

    mean = jnp.mean(queries, axis=-1, keepdims=True)
    var = jnp.mean((queries - mean) ** 2, axis=-1, keepdims=True)
    qn = (queries - mean) * lax.rsqrt(var + LN_EPS) * params["ln_gamma"]   # beta == 0 buffer

    q = qn @ params["wq"]
    kv = x @ params["wkv"]
    k, v = kv[..., :inner], kv[..., inner:]

    def split_heads(t):
        return t.reshape(b, n, heads, dim_head).transpose(0, 2, 1, 3)

    q, k, v = split_heads(q), split_heads(k), split_heads(v)
    scale = float(dim_head) ** 0.5

    def rms(t, gamma):
        nrm = jnp.sqrt(jnp.sum(t * t, axis=-1, keepdims=True))
        return t / jnp.maximum(nrm, NORM_EPS) * scale * gamma[None, :, None, :]

    q = rms(q, params["q_gamma"])
    k = rms(k, params["k_gamma"])

    dots = jnp.einsum("bhid,bhjd->bhij", q, k)
    dots = jnp.where(attn_mask[:, None, None, :], dots, -FLT_MAX)
    attn = jax.nn.softmax(dots, axis=-1)
    out = jnp.einsum("bhij,bhjd->bhid", attn, v)
    out = out.transpose(0, 2, 1, 3).reshape(b, n, inner)
    pooled = out @ params["wo"] + queries
    return pooled.reshape(b * n, dim)


if __name__ == "__main__":
    b, n, dim = 4, 8, 128
    heads, dim_head = 4, 32
    inner = heads * dim_head

    key = jax.random.PRNGKey(0)
    k0, k1, k2, k3, k4, k5, k6, k7 = jax.random.split(key, 8)

    def bf16_repr(a):
        # bf16-representable inputs keep the f32 reference comparison tight despite
        # bf16 MXU operands inside the kernel.
        return a.astype(jnp.bfloat16).astype(jnp.float32)

    x = bf16_repr(jax.random.normal(k0, (b, n, dim), jnp.float32))
    # key-validity mask: last 2 patches of each sequence are padding
    attn_mask = jnp.ones((b, n), dtype=bool).at[:, n - 2:].set(False)

    params = {
        "queries": jax.random.normal(k1, (dim,), jnp.float32),
        "ln_gamma": bf16_repr(1.0 + 0.05 * jax.random.normal(k5, (dim,), jnp.float32)),
        "wq": bf16_repr(jax.random.normal(k2, (dim, inner), jnp.float32) * 0.05),
        "wkv": bf16_repr(jax.random.normal(k3, (dim, 2 * inner), jnp.float32) * 0.05),
        "q_gamma": bf16_repr(1.0 + 0.05 * jax.random.normal(k6, (heads, dim_head), jnp.float32)),
        "k_gamma": bf16_repr(1.0 + 0.05 * jax.random.normal(k7, (heads, dim_head), jnp.float32)),
        "wo": bf16_repr(jax.random.normal(k4, (inner, dim), jnp.float32) * 0.05),
    }

    ref = attention_pooling_ref(x, attn_mask, params, heads=heads, dim_head=dim_head)

    # 1) auto-sized batch_tile (heuristic), 2) explicit 2-element tile (2 grid steps).
    out_a = jax.block_until_ready(
        attention_pooling(x, attn_mask, params, heads=heads, dim_head=dim_head))
    out_b = jax.block_until_ready(
        attention_pooling(x, attn_mask, params, heads=heads, dim_head=dim_head, batch_tile=2))

    for out in (out_a, out_b):
        assert out.shape == (b * n, dim), out.shape
        max_err = float(jnp.max(jnp.abs(out - ref)))
        assert jnp.allclose(out, ref, rtol=2e-2, atol=3e-2), max_err

    print("KERNEL_OK")
</pallas_src>

<mosaic_0001>
module attributes {stable_mosaic.version = 11 : i64} {
  func.func @attention_pool_kernel(%arg0: i32, %arg1: memref<32x128xf32, #tpu.memory_space<vmem>>, %arg2: memref<32x1xf32, #tpu.memory_space<vmem>>, %arg3: memref<1x128xf32, #tpu.memory_space<vmem>>, %arg4: memref<1x4xf32, #tpu.memory_space<vmem>>, %arg5: memref<1x128xf32, #tpu.memory_space<vmem>>, %arg6: memref<128x256xbf16, #tpu.memory_space<vmem>>, %arg7: memref<128x4xbf16, #tpu.memory_space<vmem>>, %arg8: memref<4x128xbf16, #tpu.memory_space<vmem>>, %arg9: memref<4x32xbf16, #tpu.memory_space<vmem>>, %arg10: memref<128x128xbf16, #tpu.memory_space<vmem>>, %arg11: memref<1x4x128xf32, #tpu.memory_space<vmem>>, %arg12: memref<32x4xf32, #tpu.memory_space<vmem>>) attributes {dimension_semantics = [#tpu.dimension_semantics<parallel>], iteration_bounds = array<i64: 1>, scalar_prefetch = 0 : i64, scratch_operands = 1 : i64, tpu.core_type = #tpu.core_type<tc>, window_params = [{transform_indices = @transform_0, window_bounds = array<i64: 32, 128>}, {transform_indices = @transform_1, window_bounds = array<i64: 32, 1>}, {pipeline_mode = #tpu.pipeline_mode<synchronous>, transform_indices = @transform_2, window_bounds = array<i64: 1, 128>}, {pipeline_mode = #tpu.pipeline_mode<synchronous>, transform_indices = @transform_3, window_bounds = array<i64: 1, 4>}, {pipeline_mode = #tpu.pipeline_mode<synchronous>, transform_indices = @transform_4, window_bounds = array<i64: 1, 128>}, {pipeline_mode = #tpu.pipeline_mode<synchronous>, transform_indices = @transform_5, window_bounds = array<i64: 128, 256>}, {pipeline_mode = #tpu.pipeline_mode<synchronous>, transform_indices = @transform_6, window_bounds = array<i64: 128, 4>}, {pipeline_mode = #tpu.pipeline_mode<synchronous>, transform_indices = @transform_7, window_bounds = array<i64: 4, 128>}, {pipeline_mode = #tpu.pipeline_mode<synchronous>, transform_indices = @transform_8, window_bounds = array<i64: 4, 32>}, {pipeline_mode = #tpu.pipeline_mode<synchronous>, transform_indices = @transform_9, window_bounds = array<i64: 128, 128>}, {transform_indices = @transform_10, window_bounds = array<i64: 1, 4, 128>}]} {
    %c0 = arith.constant 0 : index
    %c0_0 = arith.constant 0 : index
    %0 = vector.load %arg7[%c0, %c0_0] : memref<128x4xbf16, #tpu.memory_space<vmem>>, vector<128x4xbf16>
    %c0_1 = arith.constant 0 : index
    %c0_2 = arith.constant 0 : index
    %1 = vector.load %arg8[%c0_1, %c0_2] : memref<4x128xbf16, #tpu.memory_space<vmem>>, vector<4x128xbf16>
    %c0_3 = arith.constant 0 : index
    %c0_4 = arith.constant 0 : index
    %2 = vector.load %arg9[%c0_3, %c0_4] : memref<4x32xbf16, #tpu.memory_space<vmem>>, vector<4x32xbf16>
    %c0_5 = arith.constant 0 : index
    %c0_6 = arith.constant 0 : index
    %3 = vector.load %arg3[%c0_5, %c0_6] : memref<1x128xf32, #tpu.memory_space<vmem>>, vector<1x128xf32>
    %c0_7 = arith.constant 0 : index
    %c0_8 = arith.constant 0 : index
    %4 = vector.load %arg2[%c0_7, %c0_8] : memref<32x1xf32, #tpu.memory_space<vmem>>, vector<32x1xf32>
    %cst = arith.constant 5.000000e-01 : f32
    %5 = vector.broadcast %cst : f32 to vector<32x1xf32>
    %6 = arith.cmpf ogt, %4, %5 : vector<32x1xf32>
    %c0_9 = arith.constant 0 : index
    %c0_10 = arith.constant 0 : index
    %7 = vector.load %arg1[%c0_9, %c0_10] : memref<32x128xf32, #tpu.memory_space<vmem>>, vector<32x128xf32>
    %8 = arith.truncf %7 : vector<32x128xf32> to vector<32x128xbf16>
    %c0_11 = arith.constant 0 : index
    %c0_12 = arith.constant 0 : index
    %9 = vector.load %arg6[%c0_11, %c0_12] : memref<128x256xbf16, #tpu.memory_space<vmem>>, vector<128x256xbf16>
    %cst_13 = arith.constant dense<0.000000e+00> : vector<32x256xf32>
    %10 = tpu.matmul %8, %9, %cst_13 {dimension_numbers = #tpu.dot_dimension_numbers<[1], [0], [0], [1], [0, 0, 1, 1], [], []>} : vector<32x128xbf16>, vector<128x256xbf16>, vector<32x256xf32> -> vector<32x256xf32>
    %11 = vector.extract_strided_slice %10 {offsets = [0, 0], sizes = [32, 128], strides = [1, 1]} : vector<32x256xf32> to vector<32x128xf32>
    %12 = vector.extract_strided_slice %10 {offsets = [0, 128], sizes = [32, 128], strides = [1, 1]} : vector<32x256xf32> to vector<32x128xf32>
    %13 = arith.mulf %11, %11 : vector<32x128xf32>
    %14 = arith.truncf %13 : vector<32x128xf32> to vector<32x128xbf16>
    %cst_14 = arith.constant dense<0.000000e+00> : vector<32x4xf32>
    %15 = tpu.matmul %14, %0, %cst_14 {dimension_numbers = #tpu.dot_dimension_numbers<[1], [0], [0], [1], [0, 0, 1, 1], [], []>} : vector<32x128xbf16>, vector<128x4xbf16>, vector<32x4xf32> -> vector<32x4xf32>
    %cst_15 = arith.constant 1.000000e-24 : f32
    %16 = vector.broadcast %cst_15 : f32 to vector<32x4xf32>
    %17 = arith.maximumf %15, %16 : vector<32x4xf32>
    %18 = math.rsqrt %17 : vector<32x4xf32>
    %19 = vector.broadcast %3 : vector<1x128xf32> to vector<32x128xf32>
    %20 = arith.mulf %11, %19 : vector<32x128xf32>
    %21 = arith.truncf %20 : vector<32x128xf32> to vector<32x128xbf16>
    %cst_16 = arith.constant dense<0.000000e+00> : vector<32x4xf32>
    %22 = tpu.matmul %21, %0, %cst_16 {dimension_numbers = #tpu.dot_dimension_numbers<[1], [0], [0], [1], [0, 0, 1, 1], [], []>} : vector<32x128xbf16>, vector<128x4xbf16>, vector<32x4xf32> -> vector<32x4xf32>
    %23 = arith.mulf %22, %18 : vector<32x4xf32>
    %c0_17 = arith.constant 0 : index
    %c0_18 = arith.constant 0 : index
    %24 = vector.load %arg4[%c0_17, %c0_18] : memref<1x4xf32, #tpu.memory_space<vmem>>, vector<1x4xf32>
    %cst_19 = arith.constant 0.000000e+00 : f32
    %25 = vector.broadcast %cst_19 : f32 to vector<1x4xf32>
    %26 = arith.subf %25, %24 : vector<1x4xf32>
    %27 = vector.shape_cast %6 : vector<32x1xi1> to vector<32x1xi1>
    %28 = vector.broadcast %27 : vector<32x1xi1> to vector<32x4xi1>
    %29 = vector.shape_cast %26 : vector<1x4xf32> to vector<1x4xf32>
    %30 = vector.broadcast %29 : vector<1x4xf32> to vector<32x4xf32>
    %31 = arith.select %28, %23, %30 : vector<32x4xi1>, vector<32x4xf32>
    %32 = vector.extract_strided_slice %31 {offsets = [0, 0], sizes = [8, 4], strides = [1, 1]} : vector<32x4xf32> to vector<8x4xf32>
    %cst_20 = arith.constant dense<0xFF800000> : vector<4xf32>
    %33 = vector.multi_reduction <maximumf>, %32, %cst_20 [0] : vector<8x4xf32> to vector<4xf32>
    %34 = vector.shape_cast %33 : vector<4xf32> to vector<1x4xf32>
    %35 = vector.shape_cast %34 : vector<1x4xf32> to vector<1x4xf32>
    %36 = vector.broadcast %35 : vector<1x4xf32> to vector<8x4xf32>
    %c0_21 = arith.constant 0 : index
    %c0_22 = arith.constant 0 : index
    %37 = vector.load %arg12[%c0_21, %c0_22] : memref<32x4xf32, #tpu.memory_space<vmem>>, vector<8x4xf32>
    tpu.vector_store %arg12[%c0_21, %c0_22], %36 {strides = array<i32>} : memref<32x4xf32, #tpu.memory_space<vmem>>, vector<8x4xf32>,
    %38 = vector.extract_strided_slice %31 {offsets = [8, 0], sizes = [8, 4], strides = [1, 1]} : vector<32x4xf32> to vector<8x4xf32>
    %cst_23 = arith.constant dense<0xFF800000> : vector<4xf32>
    %39 = vector.multi_reduction <maximumf>, %38, %cst_23 [0] : vector<8x4xf32> to vector<4xf32>
    %40 = vector.shape_cast %39 : vector<4xf32> to vector<1x4xf32>
    %41 = vector.shape_cast %40 : vector<1x4xf32> to vector<1x4xf32>
    %42 = vector.broadcast %41 : vector<1x4xf32> to vector<8x4xf32>
    %c8 = arith.constant 8 : index
    %c0_24 = arith.constant 0 : index
    %43 = vector.load %arg12[%c8, %c0_24] : memref<32x4xf32, #tpu.memory_space<vmem>>, vector<8x4xf32>
    tpu.vector_store %arg12[%c8, %c0_24], %42 {strides = array<i32>} : memref<32x4xf32, #tpu.memory_space<vmem>>, vector<8x4xf32>,
    %44 = vector.extract_strided_slice %31 {offsets = [16, 0], sizes = [8, 4], strides = [1, 1]} : vector<32x4xf32> to vector<8x4xf32>
    %cst_25 = arith.constant dense<0xFF800000> : vector<4xf32>
    %45 = vector.multi_reduction <maximumf>, %44, %cst_25 [0] : vector<8x4xf32> to vector<4xf32>
    %46 = vector.shape_cast %45 : vector<4xf32> to vector<1x4xf32>
    %47 = vector.shape_cast %46 : vector<1x4xf32> to vector<1x4xf32>
    %48 = vector.broadcast %47 : vector<1x4xf32> to vector<8x4xf32>
    %c16 = arith.constant 16 : index
    %c0_26 = arith.constant 0 : index
    %49 = vector.load %arg12[%c16, %c0_26] : memref<32x4xf32, #tpu.memory_space<vmem>>, vector<8x4xf32>
    tpu.vector_store %arg12[%c16, %c0_26], %48 {strides = array<i32>} : memref<32x4xf32, #tpu.memory_space<vmem>>, vector<8x4xf32>,
    %50 = vector.extract_strided_slice %31 {offsets = [24, 0], sizes = [8, 4], strides = [1, 1]} : vector<32x4xf32> to vector<8x4xf32>
    %cst_27 = arith.constant dense<0xFF800000> : vector<4xf32>
    %51 = vector.multi_reduction <maximumf>, %50, %cst_27 [0] : vector<8x4xf32> to vector<4xf32>
    %52 = vector.shape_cast %51 : vector<4xf32> to vector<1x4xf32>
    %53 = vector.shape_cast %52 : vector<1x4xf32> to vector<1x4xf32>
    %54 = vector.broadcast %53 : vector<1x4xf32> to vector<8x4xf32>
    %c24 = arith.constant 24 : index
    %c0_28 = arith.constant 0 : index
    %55 = vector.load %arg12[%c24, %c0_28] : memref<32x4xf32, #tpu.memory_space<vmem>>, vector<8x4xf32>
    tpu.vector_store %arg12[%c24, %c0_28], %54 {strides = array<i32>} : memref<32x4xf32, #tpu.memory_space<vmem>>, vector<8x4xf32>,
    %c0_29 = arith.constant 0 : index
    %c0_30 = arith.constant 0 : index
    %56 = vector.load %arg12[%c0_29, %c0_30] : memref<32x4xf32, #tpu.memory_space<vmem>>, vector<32x4xf32>
    %57 = arith.subf %23, %56 : vector<32x4xf32>
    %58 = math.exp %57 : vector<32x4xf32>
    %cst_31 = arith.constant 0.000000e+00 : f32
    %59 = vector.shape_cast %6 : vector<32x1xi1> to vector<32x1xi1>
    %60 = vector.broadcast %59 : vector<32x1xi1> to vector<32x4xi1>
    %61 = vector.broadcast %cst_31 : f32 to vector<32x4xf32>
    %62 = arith.select %60, %58, %61 : vector<32x4xi1>, vector<32x4xf32>
    %63 = arith.truncf %62 : vector<32x4xf32> to vector<32x4xbf16>
    %cst_32 = arith.constant dense<0.000000e+00> : vector<4x4xf32>
    %64 = tpu.matmul %2, %63, %cst_32 {dimension_numbers = #tpu.dot_dimension_numbers<[1], [0], [0], [1], [0, 0, 1, 1], [], []>} : vector<4x32xbf16>, vector<32x4xbf16>, vector<4x4xf32> -> vector<4x4xf32>
    %cst_33 = arith.constant 1.000000e-30 : f32
    %65 = vector.broadcast %cst_33 : f32 to vector<4x4xf32>
    %66 = arith.maximumf %64, %65 : vector<4x4xf32>
    %67 = tpu.reciprocal %66 {approx = true} : vector<4x4xf32> -> vector<4x4xf32>
    %68 = arith.truncf %62 : vector<32x4xf32> to vector<32x4xbf16>
    %cst_34 = arith.constant dense<0.000000e+00> : vector<32x128xf32>
    %69 = tpu.matmul %68, %1, %cst_34 {dimension_numbers = #tpu.dot_dimension_numbers<[1], [0], [0], [1], [0, 0, 1, 1], [], []>} : vector<32x4xbf16>, vector<4x128xbf16>, vector<32x128xf32> -> vector<32x128xf32>
    %70 = arith.mulf %69, %12 : vector<32x128xf32>
    %71 = arith.truncf %70 : vector<32x128xf32> to vector<32x128xbf16>
    %cst_35 = arith.constant dense<0.000000e+00> : vector<4x128xf32>
    %72 = tpu.matmul %2, %71, %cst_35 {dimension_numbers = #tpu.dot_dimension_numbers<[1], [0], [0], [1], [0, 0, 1, 1], [], []>} : vector<4x32xbf16>, vector<32x128xbf16>, vector<4x128xf32> -> vector<4x128xf32>
    %73 = arith.truncf %67 : vector<4x4xf32> to vector<4x4xbf16>
    %cst_36 = arith.constant dense<0.000000e+00> : vector<4x128xf32>
    %74 = tpu.matmul %73, %1, %cst_36 {dimension_numbers = #tpu.dot_dimension_numbers<[1], [0], [0], [1], [0, 0, 1, 1], [], []>} : vector<4x4xbf16>, vector<4x128xbf16>, vector<4x128xf32> -> vector<4x128xf32>
    %75 = arith.mulf %72, %74 : vector<4x128xf32>
    %76 = arith.truncf %75 : vector<4x128xf32> to vector<4x128xbf16>
    %c0_37 = arith.constant 0 : index
    %c0_38 = arith.constant 0 : index
    %77 = vector.load %arg10[%c0_37, %c0_38] : memref<128x128xbf16, #tpu.memory_space<vmem>>, vector<128x128xbf16>
    %cst_39 = arith.constant dense<0.000000e+00> : vector<4x128xf32>
    %78 = tpu.matmul %76, %77, %cst_39 {dimension_numbers = #tpu.dot_dimension_numbers<[1], [0], [0], [1], [0, 0, 1, 1], [], []>} : vector<4x128xbf16>, vector<128x128xbf16>, vector<4x128xf32> -> vector<4x128xf32>
    %c0_40 = arith.constant 0 : index
    %c0_41 = arith.constant 0 : index
    %79 = vector.load %arg5[%c0_40, %c0_41] : memref<1x128xf32, #tpu.memory_space<vmem>>, vector<1x128xf32>
    %80 = vector.broadcast %79 : vector<1x128xf32> to vector<4x128xf32>
    %81 = arith.addf %78, %80 : vector<4x128xf32>
    %c0_42 = arith.constant 0 : index
    %c0_43 = arith.constant 0 : index
    %c0_44 = arith.constant 0 : index
    %82 = vector.load %arg11[%c0_42, %c0_43, %c0_44] : memref<1x4x128xf32, #tpu.memory_space<vmem>>, vector<1x4x128xf32>
    %83 = vector.shape_cast %82 : vector<1x4x128xf32> to vector<4x128xf32>
    %84 = vector.shape_cast %81 : vector<4x128xf32> to vector<1x4x128xf32>
    tpu.vector_store %arg11[%c0_42, %c0_43, %c0_44], %84 {strides = array<i32>} : memref<1x4x128xf32, #tpu.memory_space<vmem>>, vector<1x4x128xf32>,
    return
  }
  func.func @transform_0(%arg0: i32) -> (i32, i32) {
    %c0_i32 = arith.constant 0 : i32
    %c0_i32_0 = arith.constant 0 : i32
    return %arg0, %c0_i32 : i32, i32
  }
  func.func @transform_1(%arg0: i32) -> (i32, i32) {
    %c0_i32 = arith.constant 0 : i32
    %c0_i32_0 = arith.constant 0 : i32
    return %arg0, %c0_i32 : i32, i32
  }
  func.func @transform_2(%arg0: i32) -> (i32, i32) {
    %c0_i32 = arith.constant 0 : i32
    %c0_i32_0 = arith.constant 0 : i32
    %c0_i32_1 = arith.constant 0 : i32
    return %c0_i32, %c0_i32_0 : i32, i32
  }
  func.func @transform_3(%arg0: i32) -> (i32, i32) {
    %c0_i32 = arith.constant 0 : i32
    %c0_i32_0 = arith.constant 0 : i32
    %c0_i32_1 = arith.constant 0 : i32
    return %c0_i32, %c0_i32_0 : i32, i32
  }
  func.func @transform_4(%arg0: i32) -> (i32, i32) {
    %c0_i32 = arith.constant 0 : i32
    %c0_i32_0 = arith.constant 0 : i32
    %c0_i32_1 = arith.constant 0 : i32
    return %c0_i32, %c0_i32_0 : i32, i32
  }
  func.func @transform_5(%arg0: i32) -> (i32, i32) {
    %c0_i32 = arith.constant 0 : i32
    %c0_i32_0 = arith.constant 0 : i32
    %c0_i32_1 = arith.constant 0 : i32
    return %c0_i32, %c0_i32_0 : i32, i32
  }
  func.func @transform_6(%arg0: i32) -> (i32, i32) {
    %c0_i32 = arith.constant 0 : i32
    %c0_i32_0 = arith.constant 0 : i32
    %c0_i32_1 = arith.constant 0 : i32
    return %c0_i32, %c0_i32_0 : i32, i32
  }
  func.func @transform_7(%arg0: i32) -> (i32, i32) {
    %c0_i32 = arith.constant 0 : i32
    %c0_i32_0 = arith.constant 0 : i32
    %c0_i32_1 = arith.constant 0 : i32
    return %c0_i32, %c0_i32_0 : i32, i32
  }
  func.func @transform_8(%arg0: i32) -> (i32, i32) {
    %c0_i32 = arith.constant 0 : i32
    %c0_i32_0 = arith.constant 0 : i32
    %c0_i32_1 = arith.constant 0 : i32
    return %c0_i32, %c0_i32_0 : i32, i32
  }
  func.func @transform_9(%arg0: i32) -> (i32, i32) {
    %c0_i32 = arith.constant 0 : i32
    %c0_i32_0 = arith.constant 0 : i32
    %c0_i32_1 = arith.constant 0 : i32
    return %c0_i32, %c0_i32_0 : i32, i32
  }
  func.func @transform_10(%arg0: i32) -> (i32, i32, i32) {
    %c0_i32 = arith.constant 0 : i32
    %c0_i32_0 = arith.constant 0 : i32
    %c0_i32_1 = arith.constant 0 : i32
    return %arg0, %c0_i32, %c0_i32_0 : i32, i32, i32
  }
}

</mosaic_0001>

<bundles_post_ra>
// kernel: tpu_custom_call.1
= control target key start
LH: loop header
LB: loop body
LE: loop exit
PB: predicated region body
PF: predicated region fallthrough
CT: control target
= control target key end

     0   :  { %15 = vsyncpa [#allocation4], 0  ;;  %s1372_s0 = inlined_call_operand.vmem [shape: f32[32,128], index: 0, kind: input, shape index: {}]   ;;  %s1373_s1 = inlined_call_operand.vmem [shape: f32[32,1], index: 1, kind: input, shape index: {}]   ;;  %s1374_s2 = inlined_call_operand.vmem [shape: f32[1,128], index: 2, kind: input, shape index: {}]   ;;  %s1375_s3 = inlined_call_operand.vmem [shape: f32[1,4], index: 3, kind: input, shape index: {}]   ;;  %s1376_s4 = inlined_call_operand.vmem [shape: f32[1,128], index: 4, kind: input, shape index: {}]   ;;  %s1377_s5 = inlined_call_operand.hbm [shape: bf16[128,256], index: 5, kind: input, shape index: {}]   ;;  %s1378_s6 = inlined_call_operand.vmem [shape: bf16[128,4], index: 6, kind: input, shape index: {}]   ;;  %s1379_s7 = inlined_call_operand.vmem [shape: bf16[4,128], index: 7, kind: input, shape index: {}]   ;;  %s1380_s8 = inlined_call_operand.vmem [shape: bf16[4,32], index: 8, kind: input, shape index: {}]   ;;  %s1381_s9 = inlined_call_operand.vmem [shape: bf16[128,128], index: 9, kind: input, shape index: {}]   ;;  %s1382_s10 = inlined_call_operand.hbm [shape: f32[1,4,128], index: 10, kind: output, shape index: {}]  }
   0x1   :  { %16 = vsyncpa [#allocation5], 0  ;;  %s1109_s13 = smov [#allocation3]   ;;  %s1061_s17 = scalar_lea.hbm %s1377_s5, 2048 }
   0x2   :  { %s32_s14 = sshll.u32 %s1109_s13, 4  ;;  %p1062_p0 = scmp.ne.s32.totalorder %s1377_s5, %s1061_s17  ;;  %s33_s14 = int_to_ptr.vmem [resolvable:$true] %s32_s14 }
   0x3   :  { %p1065_p1 = scmp.lt.u32.totalorder %s1061_s17, %s1377_s5 }
   0x5   :  { %p1067_p2 = pnand %p1065_p1, %p1062_p0 }
   0x7   :  { %1070 = shalt.err (!%p1067_p2)
}
   0x8   :  { %s1071_s22 = scalar_lea.vmem %s33_s14, 2048  ;;  %p1076_p4 = scmp.lt.s32.totalorder %s33_s14, %s33_s14 }
   0x9   :  { %p1072_p3 = scmp.ne.s32.totalorder %s33_s14, %s1071_s22  ;;  %p1077_p5 = scmp.lt.s32.totalorder %s1071_s22, %s1071_s22 }
   0xb   :  { %p1078_p6 = por %p1077_p5, %p1076_p4 }
   0xd   :  { %p1079_p7 = pnand %p1078_p6, %p1072_p3 }
   0xf   :  { %1082 = shalt.err (!%p1079_p7)
}
  0x10   :  { %s1110_s23 = smov 128   ;;  %s1111_s24 = smov 8  }
  0x11   :  { %38 = dma.hbm_to_vmem [thread:$0]  %s1377_s5, 2048, %s33_s14, [#allocation4], %s1110_s23, %s1110_s23, %s1111_s24  }
  0x12   :  { %1105 = dma.done.wait [#allocation4], 2048  }
  0x13   :  { %1106 = vsyncadd [#allocation4], 4294965248  ;;  %v1112_v0 = vmov 0   ;;  %v1003_v1 = vld [vmem:[#allocation3 + $0x4] ss:$8 sps:$4 sm:$0xff]   ;;  %v1029_v14 = vld [vmem:[%s1378_s6 + $0x10] sm:$0xff]   ;;  %v432_v63 = vlaneseq }
  0x14   :  { %212 = vmatprep.mubr.bf16.mxu0 %v1112_v0  ;;  %1001 = vset.pattern.permute.xlu0 %v1112_v0  ;;  %v1005_v2 = vld [vmem:[#allocation3] ss:$8 sps:$4 sm:$0xff]   ;;  %v1006_v3 = vld [vmem:[#allocation3 + $0x14] ss:$8 sps:$4 sm:$0xff]   ;;  %v1008_v4 = vld [vmem:[#allocation3 + $0x10] ss:$8 sps:$4 sm:$0xff]  }
  0x15   :  { %1002 = vset.pattern.permute.xlu1 %v1112_v0  ;;  %180 = vmatprep.subr.bf16.mxu0 %v1003_v1  ;;  %v1009_v5 = vld [vmem:[#allocation3 + $0x24] ss:$8 sps:$4 sm:$0xff]   ;;  %v1011_v6 = vld [vmem:[#allocation3 + $0x20] ss:$8 sps:$4 sm:$0xff]   ;;  %v1012_v7 = vld [vmem:[#allocation3 + $0x34] ss:$8 sps:$4 sm:$0xff]  }
  0x16   :  { %181 = vmatpush1.bf16.msra.mxu0 %v1005_v2  ;;  %v1014_v8 = vld [vmem:[#allocation3 + $0x30] ss:$8 sps:$4 sm:$0xff]   ;;  %v1015_v9 = vld [vmem:[#allocation3 + $0x44] ss:$8 sps:$4 sm:$0xff]   ;;  %v1017_v12 = vld [vmem:[#allocation3 + $0x40] ss:$8 sps:$4 sm:$0xff]  }
  0x17   :  { %182 = vmatprep.subr.bf16.mxu0 %v1006_v3  ;;  %v1027_v10 = vld [vmem:[%s1378_s6] sm:$0xff]   ;;  %v1028_v11 = vld [vmem:[%s1378_s6 + $0x8] sm:$0xff]   ;;  %v1018_v13 = vld [vmem:[#allocation3 + $0x54] ss:$8 sps:$4 sm:$0xff]   ;;  %v1113_v60 = vmov 0.0   ;;  %vm1114_vm4 = vmmov 0  }
  0x18   :  { %905 = vmatprep.subr.bf16.mxu1 %v1027_v10  ;;  %v1020_v15 = vld [vmem:[#allocation3 + $0x50] ss:$8 sps:$4 sm:$0xff]   ;;  %v1021_v16 = vld [vmem:[#allocation3 + $0x64] ss:$8 sps:$4 sm:$0xff]   ;;  %v1023_v18 = vld [vmem:[#allocation3 + $0x60] ss:$8 sps:$4 sm:$0xff]  }
  0x19   :  { %906 = vmatpush3.bf16.msra.mxu1 %v1027_v10  ;;  %v1030_v17 = vld [vmem:[%s1378_s6 + $0x18] sm:$0xff]   ;;  %v1031_v20 = vld [vmem:[%s1378_s6 + $0x20] sm:$0xff]   ;;  %v79_v23 = vld [vmem:[%s1372_s0 + $0x8] sm:$0xff]  ;;  %vm441_vm6 = vcmask 31744   ;;  %vm548_vm11 = vcmask 1041408   ;;  %vm496_vm13 = vcmask 261120  }
  0x1a   :  { %183 = vmatpush1.bf16.msra.mxu0 %v1008_v4  ;;  %907 = vmatprep.subr.bf16.mxu1 %v1028_v11  ;;  %v1024_v19 = vld [vmem:[#allocation3 + $0x74] ss:$8 sps:$4 sm:$0xff]   ;;  %v1026_v21 = vld [vmem:[#allocation3 + $0x70] ss:$8 sps:$4 sm:$0xff]   ;;  %v78_v22 = vld [vmem:[%s1372_s0] sm:$0xff] }
  0x1b   :  { %184 = vmatprep.subr.bf16.mxu0 %v1009_v5  ;;  %v82_v24 = vpack.c.bf16 %v79_v23, %v78_v22  ;;  %v80_v25 = vld [vmem:[%s1372_s0 + $0x10] sm:$0xff]  ;;  %v81_v26 = vld [vmem:[%s1372_s0 + $0x18] sm:$0xff]  ;;  %v1032_v28 = vld [vmem:[%s1378_s6 + $0x28] sm:$0xff]  }
  0x1c   :  { %v83_v27 = vpack.c.bf16 %v81_v26, %v80_v25  ;;  %v1033_v29 = vld [vmem:[%s1378_s6 + $0x30] sm:$0xff]   ;;  %v1034_v30 = vld [vmem:[%s1378_s6 + $0x38] sm:$0xff]   ;;  %v70_v31 = vld [vmem:[%s1373_s1] sm:$0xff]  ;;  %s1115_s6 = smov [#allocation6]  }
  0x1d   :  { %908 = vmatpush3.bf16.msra.mxu1 %v1028_v11  ;;  %v72_v32 = vld [vmem:[%s1373_s1 + $0x10] sm:$0xff]  ;;  %v71_v33 = vld [vmem:[%s1373_s1 + $0x8] sm:$0xff]  ;;  %vm74_vm0 = vcmp.gt.f32.partialorder %v70_v31, 0.5  ;;  %v73_v34 = vld [vmem:[%s1373_s1 + $0x18] sm:$0xff]  ;;  %s811_s14 = sshll.u32 %s1115_s6, 4  ;;  %s812_s14 = int_to_ptr.vmem [resolvable:$true] %s811_s14 }
  0x1e   :  { %185 = vmatpush1.bf16.msra.mxu0 %v1011_v6  ;;  %909 = vmatprep.subr.bf16.mxu1 %v1029_v14  ;;  %vm76_vm1 = vcmp.gt.f32.partialorder %v72_v32, 0.5  ;;  %vm75_vm2 = vcmp.gt.f32.partialorder %v71_v33, 0.5  ;;  %v411_v35 = vsel %vm74_vm0, 1, %v1112_v0  ;;  %vm77_vm3 = vcmp.gt.f32.partialorder %v73_v34, 0.5  ;;  %v844_v39 = vld [vmem:[%s1374_s2] ss:$0 sm:$0xff]  ;;  %p1088_p9 = scmp.lt.s32.totalorder %s812_s14, %s812_s14 }
  0x1f   :  { %186 = vmatprep.subr.bf16.mxu0 %v1012_v7  ;;  %v413_v36 = vsel %vm76_vm1, 1, %v1112_v0  ;;  %416 = vperm.xlu0 %1001, %v411_v35   ;;  %v412_v37 = vsel %vm75_vm2, 1, %v1112_v0  ;;  %v414_v38 = vsel %vm77_vm3, 1, %v1112_v0 }
  0x20   :  { %422 = vperm.xlu1 %1002, %v413_v36  }
  0x21   :  { %910 = vmatpush3.bf16.msra.mxu1 %v1029_v14 }
  0x22   :  { %187 = vmatpush1.bf16.msra.mxu0 %v1014_v8  ;;  %911 = vmatprep.subr.bf16.mxu1 %v1030_v17 }
  0x23   :  { %188 = vmatprep.subr.bf16.mxu0 %v1015_v9  ;;  %419 = vperm.xlu0 %1001, %v412_v37  }
  0x24   :  { %425 = vperm.xlu1 %1002, %v414_v38  }
  0x25   :  { %912 = vmatpush3.bf16.msra.mxu1 %v1030_v17 }
  0x26   :  { %189 = vmatpush1.bf16.msra.mxu0 %v1017_v12  ;;  %913 = vmatprep.subr.bf16.mxu1 %v1031_v20 }
  0x27   :  { %190 = vmatprep.subr.bf16.mxu0 %v1018_v13 }
  0x29   :  { %914 = vmatpush3.bf16.msra.mxu1 %v1031_v20 }
  0x2a   :  { %191 = vmatpush1.bf16.msra.mxu0 %v1020_v15  ;;  %915 = vmatprep.subr.bf16.mxu1 %v1032_v28 }
  0x2b   :  { %192 = vmatprep.subr.bf16.mxu0 %v1021_v16 }
  0x2d   :  { %916 = vmatpush3.bf16.msra.mxu1 %v1032_v28 }
  0x2e   :  { %193 = vmatpush1.bf16.msra.mxu0 %v1023_v18  ;;  %917 = vmatprep.subr.bf16.mxu1 %v1033_v29 }
  0x2f   :  { %194 = vmatprep.subr.bf16.mxu0 %v1024_v19 }
  0x31   :  { %918 = vmatpush3.bf16.msra.mxu1 %v1033_v29 }
  0x32   :  { %195 = vmatpush1.bf16.msra.mxu0 %v1026_v21  ;;  %919 = vmatprep.subr.bf16.mxu1 %v1034_v30 }
  0x33   :  { %925 = vmatprep.subr.bf16.mxu0 %v1027_v10 }
  0x35   :  { %213 = vmatmul.mubr.bf16.vlgmr.msra.gmra.mrb[0].mxu0 %v82_v24  ;;  %920 = vmatpush3.bf16.msra.mxu1 %v1034_v30 }
  0x36   :  { %222 = vmatprep.mubr.bf16.mxu0 %v1112_v0  ;;  %926 = vmatpush3.bf16.msra.mxu0 %v1027_v10  ;;  %v433_v10 = vshrl.u32 %v432_v63, 7 }
  0x37   :  { %927 = vmatprep.subr.bf16.mxu0 %v1028_v11  ;;  %945 = vmatprep.subr.bf16.mxu1 %v1113_v60 }
  0x3a   :  { %928 = vmatpush3.bf16.msra.mxu0 %v1028_v11  ;;  %v409_v11 = vld [vmem:[%s1375_s3] sm:$0x1] }
  0x3b   :  { %929 = vmatprep.subr.bf16.mxu0 %v1029_v14  ;;  %v410_v13 = vsub.f32 0.0, %v409_v11 }
  0x3d   :  { %223 = vmatmul.mubr.bf16.gmra.mrb[4].mxu0 %v83_v27 }
  0x3e   :  { %930 = vmatpush3.bf16.msra.mxu0 %v1029_v14  ;;  %v434_v14 = vsub.s32 0, %v433_v10 }
  0x3f   :  { %931 = vmatprep.subr.bf16.mxu0 %v1030_v17 }
  0x40   :  { %v435_v16 = vrot.slane %v410_v13, %v434_v14 }
  0x42   :  { %932 = vmatpush3.bf16.msra.mxu0 %v1030_v17 }
  0x43   :  { %933 = vmatprep.subr.bf16.mxu0 %v1031_v20 }
  0x46   :  { %934 = vmatpush3.bf16.msra.mxu0 %v1031_v20 }
  0x47   :  { %935 = vmatprep.subr.bf16.mxu0 %v1032_v28 }
  0x4a   :  { %936 = vmatpush3.bf16.msra.mxu0 %v1032_v28 }
  0x4b   :  { %937 = vmatprep.subr.bf16.mxu0 %v1033_v29 }
  0x4e   :  { %938 = vmatpush3.bf16.msra.mxu0 %v1033_v29 }
  0x4f   :  { %939 = vmatprep.subr.bf16.mxu0 %v1034_v30 }
  0x52   :  { %940 = vmatpush3.bf16.msra.mxu0 %v1034_v30 }
  0x53   :  { %973 = vmatprep.subr.bf16.mxu0 %v1113_v60 }
  0x9e   :  { %v1261_v15 = vpop.permute.xlu0 %416 }
  0x9f   :  { %v1259_v12 = vpop.permute.xlu1 %422  ;;  %vm427_vm8 = vcmp.eq.s32.totalorder %v1261_v15, 1  ;;  %v68_v15 = vld [vmem:[%s1380_s8] sm:$0x3] }
  0xa0   :  { %vm429_vm5 = vcmp.eq.s32.totalorder %v1259_v12, 1  ;;  %v1035_v12 = vld [vmem:[%s1381_s9] sm:$0xff]  }
  0xa2   :  { %v1266_v23 = vpop.permute.xlu0 %419 }
  0xa3   :  { %v1263_v17 = vpop.permute.xlu1 %425  ;;  %vm428_vm9 = vcmp.eq.s32.totalorder %v1266_v23, 1 }
  0xa4   :  { %vm430_vm7 = vcmp.eq.s32.totalorder %v1263_v17, 1  ;;  %vm845_vm10 = vmpackc.low %vm428_vm9, %vm427_vm8  ;;  %v1036_v17 = vld [vmem:[%s1381_s9 + $0x8] sm:$0xff]  }
  0xa5   :  { %vm848_vm12 = vmpackc.low %vm430_vm7, %vm429_vm5 }
 0x108   :  { %v214_v40 = vpop.f32.mrb[0].mxu0 }
 0x109   :  { %v1242_v41 = vpop.f32.mrb[1].mxu0  ;;  %v233_v43 = vmul.f32 %v214_v40, %v214_v40  ;;  %v350_v44 = vmul.f32 %v844_v39, %v214_v40 }
 0x10a   :  { %v218_v42 = vpop.f32.mrb[2].mxu0 }
 0x10b   :  { %v234_v45 = vmul.f32 %v218_v42, %v218_v42  ;;  %v351_v46 = vmul.f32 %v844_v39, %v218_v42  ;;  %v1244_v47 = vpop.f32.mrb[3].mxu0 }
 0x10d   :  { %v354_v48 = vpack.c.bf16 %v351_v46, %v350_v44  ;;  %v237_v49 = vpack.c.bf16 %v234_v45, %v233_v43 }
 0x10f   :  { %921 = vmatprep.mubr.bf16.mxu1 %v237_v49  ;;  %941 = vmatprep.mubr.bf16.mxu0 %v354_v48 }
 0x110   :  { %v224_v50 = vpop.f32.mrb[4].mxu0 }
 0x111   :  { %v1246_v51 = vpop.f32.mrb[5].mxu0  ;;  %v235_v53 = vmul.f32 %v224_v50, %v224_v50  ;;  %v352_v54 = vmul.f32 %v844_v39, %v224_v50 }
 0x112   :  { %v228_v52 = vpop.f32.mrb[6].mxu0 }
 0x113   :  { %v236_v55 = vmul.f32 %v228_v52, %v228_v52  ;;  %v353_v56 = vmul.f32 %v844_v39, %v228_v52  ;;  %v1248_v57 = vpop.f32.mrb[7].mxu0 }
 0x115   :  { %v238_v58 = vpack.c.bf16 %v236_v55, %v235_v53  ;;  %v355_v59 = vpack.c.bf16 %v353_v56, %v352_v54 }
 0x117   :  { %922 = vmatmul.mubr.bf16.vlgmr.msra.gmra.mrb[0].mxu1 %v238_v58  ;;  %942 = vmatmul.mubr.bf16.vlgmr.msra.gmra.mrb[8].mxu0 %v355_v59 }
 0x118   :  { %949 = vmatprep.mubr.msk.bf16.mxu1 %vm1114_vm4, %v1113_v60  ;;  %989 = vmatprep.mubr.msk.bf16.mxu0 %vm1114_vm4, %v1113_v60 }
 0x119   :  { %974 = vmatpush3.bf16.msra.mxu0 %v1035_v12 }
 0x11a   :  { %975 = vmatprep.subr.bf16.mxu0 %v1113_v60 }
 0x11d   :  { %976 = vmatpush3.bf16.msra.mxu0 %v1036_v17 }
 0x11e   :  { %977 = vmatprep.subr.bf16.mxu0 %v1113_v60 }
 0x1ea   :  { %v923_v61 = vpop.f32.mrb[0].mxu1  ;;  %v943_v62 = vpop.f32.mrb[8].mxu0 }
 0x1eb   :  { %v338_v0 = vmax.f32 %v923_v61, 1e-24  ;;  %v321_v1 = vpop.f32.mrb[1].mxu1  ;;  %v390_v2 = vpop.f32.mrb[9].mxu0 }
 0x1ec   :  { %v336_v3 = vmax.f32 %v321_v1, 1e-24  ;;  %v924_v4 = vpop.f32.mrb[2].mxu1  ;;  %v944_v5 = vpop.f32.mrb[10].mxu0 }
 0x1ed   :  { %1043 = vrsqrt.f32 %v338_v0  ;;  %v339_v6 = vmax.f32 %v924_v4, 1e-24  ;;  %v324_v7 = vpop.f32.mrb[3].mxu1  ;;  %v393_v8 = vpop.f32.mrb[11].mxu0 }
 0x1ee   :  { %1045 = vrsqrt.f32 %v336_v3  ;;  %v337_v9 = vmax.f32 %v324_v7, 1e-24 }
 0x1ef   :  { %1047 = vrsqrt.f32 %v339_v6 }
 0x1f0   :  { %1049 = vrsqrt.f32 %v337_v9 }
 0x1f7   :  { %v1044_v18 = vpop.eup %1043 }
 0x1f8   :  { %v1046_v19 = vpop.eup %1045  ;;  %v407_v20 = vmul.f32 %v1044_v18, %v943_v62 }
 0x1f9   :  { %v1048_v21 = vpop.eup %1047  ;;  %v405_v22 = vmul.f32 %v1046_v19, %v390_v2 }
 0x1fa   :  { %v1050_v24 = vpop.eup %1049  ;;  %v408_v25 = vmul.f32 %v1048_v21, %v944_v5  ;;  %v439_v26 = vsel %vm429_vm5, %v407_v20, %v435_v16 }
 0x1fb   :  { %v406_v27 = vmul.f32 %v1050_v24, %v393_v8  ;;  %v437_v28 = vsel %vm427_vm8, %v405_v22, %v435_v16  ;;  %v458_v29 = vsel %vm441_vm6, %v439_v26, -inf }
 0x1fc   :  { %v442_v30 = vsel %vm441_vm6, %v437_v28, -inf  ;;  %v459_v31 = vrot.slane %v458_v29, 4  ;;  %v440_v32 = vsel %vm430_vm7, %v408_v25, %v435_v16  ;;  %v67_v28 = vld [vmem:[%s1379_s7] sm:$0x3] }
 0x1fd   :  { %v443_v33 = vrot.slane %v442_v30, 4  ;;  %v438_v34 = vsel %vm428_vm9, %v406_v27, %v435_v16  ;;  %v466_v35 = vsel %vm441_vm6, %v440_v32, -inf  ;;  %v550_v23 = vsel %vm548_vm11, %v67_v28, 0 }
 0x1fe   :  { %v460_v36 = vmax.f32 %v458_v29, %v459_v31  ;;  %v450_v37 = vsel %vm441_vm6, %v438_v34, -inf  ;;  %v467_v38 = vrot.slane %v466_v35, 4  ;;  %v1037_v29 = vld [vmem:[%s1381_s9 + $0x10] sm:$0xff]   ;;  %v1039_v31 = vld [vmem:[%s1381_s9 + $0x20] sm:$0xff]  }
 0x1ff   :  { %v444_v39 = vmax.f32 %v442_v30, %v443_v33  ;;  %v451_v40 = vrot.slane %v450_v37, 4  ;;  %978 = vmatpush3.bf16.msra.mxu0 %v1037_v29  ;;  %v1038_v30 = vld [vmem:[%s1381_s9 + $0x18] sm:$0xff]  }
 0x200   :  { %v461_v42 = vrot.slane %v460_v36, 2  ;;  %v468_v43 = vmax.f32 %v466_v35, %v467_v38  ;;  %979 = vmatprep.subr.bf16.mxu0 %v1113_v60 }
 0x201   :  { %v445_v44 = vrot.slane %v444_v39, 2  ;;  %v452_v45 = vmax.f32 %v450_v37, %v451_v40 }
 0x202   :  { %v462_v46 = vmax.f32 %v460_v36, %v461_v42  ;;  %v469_v48 = vrot.slane %v468_v43, 2 }
 0x203   :  { %v446_v49 = vmax.f32 %v444_v39, %v445_v44  ;;  %v453_v50 = vrot.slane %v452_v45, 2  ;;  %980 = vmatpush3.bf16.msra.mxu0 %v1038_v30 }
 0x204   :  { %v463_v52 = vrot.slane %v462_v46, 1  ;;  %v470_v53 = vmax.f32 %v468_v43, %v469_v48  ;;  %981 = vmatprep.subr.bf16.mxu0 %v1113_v60 }
 0x205   :  { %v447_v54 = vrot.slane %v446_v49, 1  ;;  %v454_v55 = vmax.f32 %v452_v45, %v453_v50 }
 0x206   :  { %v464_v56 = vmax.f32 %v462_v46, %v463_v52  ;;  %v471_v58 = vrot.slane %v470_v53, 1 }
 0x207   :  { %v448_v59 = vmax.f32 %v446_v49, %v447_v54  ;;  %v455_v61 = vrot.slane %v454_v55, 1  ;;  %982 = vmatpush3.bf16.msra.mxu0 %v1039_v31  ;;  %v1042_v49 = vld [vmem:[%s1381_s9 + $0x38] sm:$0xff]  }
 0x208   :  { %465 = vst.msk [vmem:[#allocation2 + $0x10] sm:$0xff] %vm441_vm6, %v464_v56  ;;  %v472_v62 = vmax.f32 %v470_v53, %v471_v58  ;;  %983 = vmatprep.subr.bf16.mxu0 %v1113_v60 }
 0x209   :  { %449 = vst.msk [vmem:[#allocation2] sm:$0xff] %vm441_vm6, %v448_v59  ;;  %v456_v63 = vmax.f32 %v454_v55, %v455_v61 }
 0x20a   :  { %473 = vst.msk [vmem:[#allocation2 + $0x18] sm:$0xff] %vm441_vm6, %v472_v62 }
 0x20b   :  { %457 = vst.msk [vmem:[#allocation2 + $0x8] sm:$0xff] %vm441_vm6, %v456_v63 }
 0x20f   :  { %v476_v0 = vld [vmem:[#allocation2 + $0x10] sm:$0xff] }
 0x210   :  { %v474_v1 = vld [vmem:[#allocation2] sm:$0xff]  ;;  %v480_v2 = vsub.f32 %v407_v20, %v476_v0 }
 0x211   :  { %v478_v3 = vsub.f32 %v405_v22, %v474_v1  ;;  %v477_v4 = vld [vmem:[#allocation2 + $0x18] sm:$0xff] }
 0x212   :  { %v486_v5 = vmul.f32 1.442695, %v480_v2  ;;  %v475_v6 = vld [vmem:[#allocation2 + $0x8] sm:$0xff]  ;;  %v481_v7 = vsub.f32 %v408_v25, %v477_v4 }
 0x213   :  { %v482_v8 = vmul.f32 1.442695, %v478_v3  ;;  %v479_v9 = vsub.f32 %v406_v27, %v475_v6 }
 0x214   :  { %1051 = vpow2.f32 %v486_v5  ;;  %v488_v10 = vmul.f32 1.442695, %v481_v7 }
 0x215   :  { %1053 = vpow2.f32 %v482_v8  ;;  %v484_v11 = vmul.f32 1.442695, %v479_v9 }
 0x216   :  { %1055 = vpow2.f32 %v488_v10 }
 0x217   :  { %1057 = vpow2.f32 %v484_v11 }
 0x21e   :  { %v1052_v13 = vpop.eup %1051 }
 0x21f   :  { %v1054_v14 = vpop.eup %1053  ;;  %v492_v19 = vsel %vm429_vm5, %v1052_v13, 0.0 }
 0x220   :  { %v1056_v16 = vpop.eup %1055  ;;  %v490_v22 = vsel %vm427_vm8, %v1054_v14, 0.0 }
 0x221   :  { %v1058_v18 = vpop.eup %1057  ;;  %v493_v20 = vsel %vm430_vm7, %v1056_v16, 0.0  ;;  %v849_v21 = vpack.c.bf16 %v1056_v16, %v1052_v13 }
 0x222   :  { %v491_v24 = vsel %vm428_vm9, %v1058_v18, 0.0  ;;  %v495_v25 = vpack.c.bf16 %v493_v20, %v492_v19  ;;  %v846_v26 = vpack.c.bf16 %v1058_v18, %v1054_v14 }
 0x223   :  { %v494_v27 = vpack.c.bf16 %v491_v24, %v490_v22 }
 0x224   :  { %946 = vmatpush3.bf16.msk.msra.mxu1 %vm845_vm10, %v846_v26 }
 0x225   :  { %947 = vmatprep.subr.bf16.mxu1 %v1113_v60 }
 0x228   :  { %948 = vmatpush3.bf16.msk.msra.mxu1 %vm848_vm12, %v849_v21 }
 0x229   :  { %993 = vmatprep.subr.msk.bf16.mxu1 %vm548_vm11, %v67_v28 }
 0x22b   :  { %950 = vmatmul.mubr.msk.bf16.vlgmr.msra.gmra.mrb[4].mxu1 %vm496_vm13, %v68_v15 }
 0x22c   :  { %954 = vmatpush3.bf16.msra.mxu1 %v550_v23  ;;  %955 = vmatprep.mubr.msk.bf16.mxu1 %vm441_vm6, %v494_v27 }
 0x22d   :  { %959 = vmatprep.subr.bf16.mxu1 %v1113_v60 }
 0x233   :  { %956 = vmatmul.mubr.msk.bf16.vlgmr.msra.gmra.mrb[8].mxu1 %vm441_vm6, %v495_v25 }
 0x234   :  { %963 = vmatprep.mubr.msk.bf16.mxu1 %vm1114_vm4, %v1113_v60 }
 0x2fe   :  { %v534_v32 = vpop.f32.mrb[4].mxu1 }
 0x2ff   :  { %v951_v33 = vpop.f32.mrb[5].mxu1  ;;  %v540_v44 = vmax.f32 %v534_v32, 1e-30 }
 0x300   :  { %v537_v34 = vpop.f32.mrb[6].mxu1 }
 0x301   :  { %v952_v35 = vpop.f32.mrb[7].mxu1  ;;  %1059 = vrcp.f32 %v540_v44 }
 0x306   :  { %v957_v36 = vpop.f32.mrb[8].mxu1 }
 0x307   :  { %v603_v37 = vmul.f32 %v957_v36, %v1246_v51  ;;  %v586_v38 = vpop.f32.mrb[9].mxu1 }
 0x308   :  { %v601_v39 = vmul.f32 %v586_v38, %v1242_v41  ;;  %v958_v40 = vpop.f32.mrb[10].mxu1 }
 0x309   :  { %v604_v42 = vmul.f32 %v958_v40, %v1248_v57  ;;  %v589_v43 = vpop.f32.mrb[11].mxu1  ;;  %v1041_v57 = vld [vmem:[%s1381_s9 + $0x30] sm:$0xff]  }
 0x30a   :  { %v602_v45 = vmul.f32 %v589_v43, %v1244_v47  ;;  %v1040_v47 = vld [vmem:[%s1381_s9 + $0x28] sm:$0xff]   ;;  %s1083_s9 = scalar_lea.vmem %s812_s14, 64 }
 0x30b   :  { %v606_v46 = vpack.c.bf16 %v604_v42, %v603_v37  ;;  %v1060_v41 = vpop.eup %1059  ;;  %984 = vmatpush3.bf16.msra.mxu0 %v1040_v47  ;;  %p1084_p8 = scmp.ne.s32.totalorder %s812_s14, %s1083_s9  ;;  %p1089_p10 = scmp.lt.s32.totalorder %s1083_s9, %s1083_s9 }
 0x30c   :  { %v605_v48 = vpack.c.bf16 %v602_v45, %v601_v39  ;;  %v647_v51 = vpack.c.bf16 %v1060_v41, %v1060_v41  ;;  %985 = vmatprep.subr.bf16.mxu0 %v1113_v60 }
 0x30d   :  { %p1090_p11 = por %p1089_p10, %p1088_p9 }
 0x30e   :  { %960 = vmatpush3.bf16.msra.mxu1 %v605_v48 }
 0x30f   :  { %961 = vmatprep.subr.bf16.mxu1 %v1113_v60  ;;  %986 = vmatpush3.bf16.msra.mxu0 %v1041_v57  ;;  %p1091_p12 = pnand %p1090_p11, %p1084_p8 }
 0x310   :  { %987 = vmatprep.subr.bf16.mxu0 %v1113_v60 }
 0x312   :  { %962 = vmatpush3.bf16.msra.mxu1 %v606_v46 }
 0x313   :  { %967 = vmatprep.subr.bf16.mxu1 %v1113_v60  ;;  %988 = vmatpush3.bf16.msra.mxu0 %v1042_v49 }
 0x315   :  { %964 = vmatmul.mubr.msk.bf16.vlgmr.msra.gmra.mrb[12].mxu1 %vm496_vm13, %v68_v15 }
 0x316   :  { %968 = vmatpush3.bf16.msra.mxu1 %v550_v23  ;;  %969 = vmatprep.mubr.msk.bf16.mxu1 %vm1114_vm4, %v1113_v60  ;;  %v856_v60 = vld [vmem:[%s1376_s4] ss:$0 sm:$0xff] }
 0x31d   :  { %970 = vmatmul.mubr.msk.bf16.vlgmr.msra.gmra.mrb[16].mxu1 %vm441_vm6, %v647_v51 }
 0x3e8   :  { %v641_v50 = vpop.f32.mrb[12].mxu1 }
 0x3e9   :  { %v965_v52 = vpop.f32.mrb[13].mxu1 }
 0x3ea   :  { %v644_v53 = vpop.f32.mrb[14].mxu1 }
 0x3eb   :  { %v966_v54 = vpop.f32.mrb[15].mxu1 }
 0x3f0   :  { %v685_v55 = vpop.f32.mrb[16].mxu1 }
 0x3f1   :  { %v691_v56 = vmul.f32 %v685_v55, %v641_v50  ;;  %v971_v58 = vpop.f32.mrb[17].mxu1 }
 0x3f2   :  { %v688_v59 = vpop.f32.mrb[18].mxu1 }
 0x3f3   :  { %v692_v61 = vpack.c.bf16 %v691_v56, %v691_v56  ;;  %v972_v62 = vpop.f32.mrb[19].mxu1 }
 0x3f5   :  { %990 = vmatmul.mubr.bf16.vlgmr.msra.gmra.mrb[12].mxu0 %v692_v61 }
 0x4c8   :  { %v798_v63 = vpop.f32.mrb[12].mxu0 }
 0x4c9   :  { %v799_v0 = vadd.f32 %v856_v60, %v798_v63  ;;  %v991_v1 = vpop.f32.mrb[13].mxu0 }
 0x4ca   :  { %v801_v2 = vpop.f32.mrb[14].mxu0 }
 0x4cb   :  { %804 = vst [vmem:[#allocation6] sm:$0xf] %v799_v0  ;;  %v992_v3 = vpop.f32.mrb[15].mxu0 }
 0x4cc   :  { %1094 = shalt.err (!%p1091_p12)
}
 0x4cd   :  { %s1095_s4 = scalar_lea.hbm %s1382_s10, 64 }
 0x4ce   :  { %p1096_p13 = scmp.ne.s32.totalorder %s1382_s10, %s1095_s4  ;;  %p1099_p0 = scmp.lt.u32.totalorder %s1095_s4, %s1382_s10 }
 0x4d0   :  { %p1101_p1 = pnand %p1099_p0, %p1096_p13 }
 0x4d2   :  { %1104 = shalt.err (!%p1101_p1)
}
 0x4d3   :  { %814 = dma.vmem_to_hbm [thread:$0]  %s812_s14, 64, %s1382_s10, [#allocation5]  }
 0x4d4   :  { %1107 = dma.done.wait [#allocation5], 64  }
 0x4d5   :  { %1108 = vsyncadd [#allocation5], 4294967232 }
 0x4d6   :  { %818 = vsyncpa [#allocation4], 1 }
 0x4d7   :  { %819 = vsyncpa [#allocation5], 1 }

</bundles_post_ra>
